<compile_context>
chip_gen: v7x
topology: tpu7x:2x2x1
jax: 0.10.0
libtpu: 0.0.40
codegen_flags: <defaults>
</compile_context>

<pallas_src>
import jax
import jax.numpy as jnp
from jax.experimental import pallas as pl
from jax.experimental.pallas import tpu as pltpu


def _chamfer_kernel(a1t_ref, a2_ref, out1_ref, out2_ref, row_min_ref, col_min_ref):
    """One (i, j) tile of the pairwise squared-distance matrix for batch b.

    a1t_ref : (1, F, TN1)  block of array1 (transposed)  -> columns of d2
    a2_ref  : (1, TN2, F)  block of array2               -> rows of d2
    out1_ref: (1, 1, 1)    per-batch sum over array2 points of min_col d2
    out2_ref: (1, 1, 1)    per-batch sum over array1 points of min_row d2
    row_min_ref: (TN2, 1)  running min across a1-column tiles (axis j)
    col_min_ref: (NJ, TN1) running min across a2-row tiles (axis i), slot per j
    """
    i = pl.program_id(1)          # a2 (row) tile index
    j = pl.program_id(2)          # a1 (column) tile index
    n_i = pl.num_programs(1)
    n_j = pl.num_programs(2)

    a1t = a1t_ref[0].astype(jnp.float32)   # (F, TN1), points on the lane axis
    a2 = a2_ref[0].astype(jnp.float32)     # (TN2, F)

    # Lane-dense pairwise squared distances; F (=3) unrolled statically.
    num_features = a2.shape[1]
    d2 = None
    for k in range(num_features):
        diff = a2[:, k:k + 1] - a1t[k:k + 1, :]   # (TN2,1) - (1,TN1) -> (TN2,TN1)
        sq = diff * diff
        d2 = sq if d2 is None else d2 + sq

    # Both reductions from the same d2 tile in a single pass.
    tile_rmin = jnp.min(d2, axis=1, keepdims=True)   # (TN2, 1)
    tile_cmin = jnp.min(d2, axis=0, keepdims=True)   # (1, TN1)

    @pl.when(jnp.logical_and(i == 0, j == 0))
    def _():
        out1_ref[...] = jnp.zeros_like(out1_ref)
        out2_ref[...] = jnp.zeros_like(out2_ref)

    # Running min over j (a1 tiles) for each array2 point in row block i.
    @pl.when(j == 0)
    def _():
        row_min_ref[...] = tile_rmin

    @pl.when(j > 0)
    def _():
        row_min_ref[...] = jnp.minimum(row_min_ref[...], tile_rmin)

    # Running min over i (a2 tiles) for each array1 point in column block j.
    col_slot = col_min_ref.at[pl.ds(j, 1), :]        # (1, TN1) view

    @pl.when(i == 0)
    def _():
        col_slot[...] = tile_cmin

    @pl.when(i > 0)
    def _():
        col_slot[...] = jnp.minimum(col_slot[...], tile_cmin)

    # Row block i has seen every a1 tile -> fold its row-mins into out1.
    @pl.when(j == n_j - 1)
    def _():
        out1_ref[...] += jnp.sum(row_min_ref[...])

    # Every a2 tile has been seen -> column block j's col-mins are final.
    @pl.when(i == n_i - 1)
    def _():
        out2_ref[...] += jnp.sum(col_slot[...])


def _pick_tile(n, target, align):
    """Largest divisor of n that is a multiple of `align` and <= target, else n."""
    best = None
    t = align
    while t <= min(n, target):
        if n % t == 0:
            best = t
        t += align
    return best if best is not None else n


def point_loss_test(array1, array2, *, tile_rows=None, tile_cols=None):
    """Pallas implementation of PointLoss_test: returns (dist_all, dist1, dist2)."""
    assert array1.shape == array2.shape
    B, N, F = array1.shape

    tn2 = tile_rows if tile_rows is not None else _pick_tile(N, 256, 8)     # a2 rows / tile
    tn1 = tile_cols if tile_cols is not None else _pick_tile(N, 1024, 128)  # a1 points / tile
    assert N % tn2 == 0 and (tn2 % 8 == 0 or tn2 == N), (tn2, N)
    assert N % tn1 == 0 and (tn1 % 128 == 0 or tn1 == N), (tn1, N)
    n_i = N // tn2
    n_j = N // tn1

    # Layout plumbing only: put array1's points on the lane axis.
    array1_t = jnp.transpose(array1, (0, 2, 1))      # (B, F, N)

    sum1, sum2 = pl.pallas_call(
        _chamfer_kernel,
        out_shape=(
            jax.ShapeDtypeStruct((B, 1, 1), jnp.float32),
            jax.ShapeDtypeStruct((B, 1, 1), jnp.float32),
        ),
        grid_spec=pltpu.PrefetchScalarGridSpec(
            num_scalar_prefetch=0,
            grid=(B, n_i, n_j),
            in_specs=[
                pl.BlockSpec((1, F, tn1), lambda b, i, j: (b, 0, j)),   # array1 (transposed)
                pl.BlockSpec((1, tn2, F), lambda b, i, j: (b, i, 0)),   # array2
            ],
            out_specs=(
                pl.BlockSpec((1, 1, 1), lambda b, i, j: (b, 0, 0)),
                pl.BlockSpec((1, 1, 1), lambda b, i, j: (b, 0, 0)),
            ),
            scratch_shapes=[
                pltpu.VMEM((tn2, 1), jnp.float32),     # running row-min
                pltpu.VMEM((n_j, tn1), jnp.float32),   # running col-min (slot per j)
            ],
        ),
        compiler_params=pltpu.CompilerParams(
            dimension_semantics=("parallel", "arbitrary", "arbitrary"),
        ),
    )(array1_t, array2)

    # Means and batch reduction folded into the wrapper (single cheap scale).
    av_dist1 = sum1[:, 0, 0] / N   # per-batch mean over array2 samples of min dist to array1
    av_dist2 = sum2[:, 0, 0] / N   # per-batch mean over array1 samples of min dist to array2
    dist1 = jnp.sum(av_dist1) / B
    dist2 = jnp.sum(av_dist2) / B
    dist_all = dist1 + dist2
    return dist_all, dist1, dist2


def _point_loss_ref(array1, array2):
    """Pure-JAX reference mirroring the PyTorch chamfer_distance_numpy_test."""
    a1 = array1.astype(jnp.float32)
    a2 = array2.astype(jnp.float32)
    B = a1.shape[0]
    diff = a2[:, :, None, :] - a1[:, None, :, :]      # (B, N2, N1, F)
    d2 = jnp.sum(diff * diff, axis=-1)                # (B, N2, N1)
    av1 = jnp.mean(jnp.min(d2, axis=2), axis=1)       # array2 samples -> array1
    av2 = jnp.mean(jnp.min(d2, axis=1), axis=1)       # array1 samples -> array2
    dist1 = jnp.sum(av1) / B
    dist2 = jnp.sum(av2) / B
    return dist1 + dist2, dist1, dist2


if __name__ == "__main__":
    key = jax.random.PRNGKey(0)
    k1, k2 = jax.random.split(key)

    # Small shapes consistent with the module: (batch, num_points, num_features).
    B, N, F = 2, 16, 3
    array1 = jax.random.normal(k1, (B, N, F), dtype=jnp.float32)
    array2 = jax.random.normal(k2, (B, N, F), dtype=jnp.float32)

    out = point_loss_test(array1, array2)
    jax.block_until_ready(out)
    ref = _point_loss_ref(array1, array2)
    for got, want in zip(out, ref):
        assert jnp.allclose(got, want, rtol=1e-5, atol=1e-5), (out, ref)

    # Also exercise the multi-tile path (grid over both point-cloud axes).
    B2, N2 = 2, 512
    a = jax.random.normal(k1, (B2, N2, F), dtype=jnp.float32)
    b = jax.random.normal(k2, (B2, N2, F), dtype=jnp.float32)
    out2 = point_loss_test(a, b, tile_rows=128, tile_cols=128)
    jax.block_until_ready(out2)
    ref2 = _point_loss_ref(a, b)
    for got, want in zip(out2, ref2):
        assert jnp.allclose(got, want, rtol=1e-5, atol=1e-5), (out2, ref2)

    print("KERNEL_OK")
</pallas_src>

<mosaic_0001>
module attributes {stable_mosaic.version = 11 : i64} {
  func.func @_chamfer_kernel(%arg0: i32, %arg1: i32, %arg2: i32, %arg3: memref<1x3x16xf32, #tpu.memory_space<vmem>>, %arg4: memref<1x16x3xf32, #tpu.memory_space<vmem>>, %arg5: memref<1x1x1xf32, #tpu.memory_space<vmem>>, %arg6: memref<1x1x1xf32, #tpu.memory_space<vmem>>, %arg7: memref<16x1xf32, #tpu.memory_space<vmem>>, %arg8: memref<1x16xf32, #tpu.memory_space<vmem>>) attributes {dimension_semantics = [#tpu.dimension_semantics<parallel>, #tpu.dimension_semantics<arbitrary>, #tpu.dimension_semantics<arbitrary>], iteration_bounds = array<i64: 2, 1, 1>, scalar_prefetch = 0 : i64, scratch_operands = 2 : i64, tpu.core_type = #tpu.core_type<tc>, window_params = [{transform_indices = @transform_0, window_bounds = array<i64: 1, 3, 16>}, {transform_indices = @transform_1, window_bounds = array<i64: 1, 16, 3>}, {transform_indices = @transform_2, window_bounds = array<i64: 1, 1, 1>}, {transform_indices = @transform_3, window_bounds = array<i64: 1, 1, 1>}]} {
    %c0 = arith.constant 0 : index
    %c0_0 = arith.constant 0 : index
    %c0_1 = arith.constant 0 : index
    %0 = vector.load %arg3[%c0, %c0_0, %c0_1] : memref<1x3x16xf32, #tpu.memory_space<vmem>>, vector<1x3x16xf32>
    %1 = vector.shape_cast %0 : vector<1x3x16xf32> to vector<3x16xf32>
    %c0_2 = arith.constant 0 : index
    %c0_3 = arith.constant 0 : index
    %c0_4 = arith.constant 0 : index
    %2 = vector.load %arg4[%c0_2, %c0_3, %c0_4] : memref<1x16x3xf32, #tpu.memory_space<vmem>>, vector<1x16x3xf32>
    %3 = vector.shape_cast %2 : vector<1x16x3xf32> to vector<16x3xf32>
    %4 = vector.extract_strided_slice %3 {offsets = [0, 0], sizes = [16, 1], strides = [1, 1]} : vector<16x3xf32> to vector<16x1xf32>
    %5 = vector.extract_strided_slice %1 {offsets = [0, 0], sizes = [1, 16], strides = [1, 1]} : vector<3x16xf32> to vector<1x16xf32>
    %6 = vector.broadcast %4 : vector<16x1xf32> to vector<16x16xf32>
    %7 = vector.broadcast %5 : vector<1x16xf32> to vector<16x16xf32>
    %8 = arith.subf %6, %7 : vector<16x16xf32>
    %9 = arith.mulf %8, %8 : vector<16x16xf32>
    %10 = vector.extract_strided_slice %3 {offsets = [0, 1], sizes = [16, 1], strides = [1, 1]} : vector<16x3xf32> to vector<16x1xf32>
    %11 = vector.extract_strided_slice %1 {offsets = [1, 0], sizes = [1, 16], strides = [1, 1]} : vector<3x16xf32> to vector<1x16xf32>
    %12 = vector.broadcast %10 : vector<16x1xf32> to vector<16x16xf32>
    %13 = vector.broadcast %11 : vector<1x16xf32> to vector<16x16xf32>
    %14 = arith.subf %12, %13 : vector<16x16xf32>
    %15 = arith.mulf %14, %14 : vector<16x16xf32>
    %16 = arith.addf %9, %15 : vector<16x16xf32>
    %17 = vector.extract_strided_slice %3 {offsets = [0, 2], sizes = [16, 1], strides = [1, 1]} : vector<16x3xf32> to vector<16x1xf32>
    %18 = vector.extract_strided_slice %1 {offsets = [2, 0], sizes = [1, 16], strides = [1, 1]} : vector<3x16xf32> to vector<1x16xf32>
    %19 = vector.broadcast %17 : vector<16x1xf32> to vector<16x16xf32>
    %20 = vector.broadcast %18 : vector<1x16xf32> to vector<16x16xf32>
    %21 = arith.subf %19, %20 : vector<16x16xf32>
    %22 = arith.mulf %21, %21 : vector<16x16xf32>
    %23 = arith.addf %16, %22 : vector<16x16xf32>
    %cst = arith.constant dense<0x7F800000> : vector<16xf32>
    %24 = vector.multi_reduction <minimumf>, %23, %cst [1] : vector<16x16xf32> to vector<16xf32>
    %25 = vector.shape_cast %24 : vector<16xf32> to vector<16x1xf32>
    %cst_5 = arith.constant dense<0x7F800000> : vector<16xf32>
    %26 = vector.multi_reduction <minimumf>, %23, %cst_5 [0] : vector<16x16xf32> to vector<16xf32>
    %27 = vector.shape_cast %26 : vector<16xf32> to vector<1x16xf32>
    %c0_i32 = arith.constant 0 : i32
    %28 = arith.cmpi eq, %arg1, %c0_i32 : i32
    %c0_i32_6 = arith.constant 0 : i32
    %29 = arith.cmpi eq, %arg2, %c0_i32_6 : i32
    %30 = arith.andi %28, %29 : i1
    %31 = arith.extui %30 : i1 to i32
    %c0_i32_7 = arith.constant 0 : i32
    %32 = arith.cmpi ne, %31, %c0_i32_7 : i32
    scf.if %32 {
      %cst_20 = arith.constant 0.000000e+00 : f32
      %51 = vector.broadcast %cst_20 : f32 to vector<1x1x1xf32>
      %c0_21 = arith.constant 0 : index
      %c0_22 = arith.constant 0 : index
      %c0_23 = arith.constant 0 : index
      %52 = vector.load %arg5[%c0_21, %c0_22, %c0_23] : memref<1x1x1xf32, #tpu.memory_space<vmem>>, vector<1x1x1xf32>
      tpu.vector_store %arg5[%c0_21, %c0_22, %c0_23], %51 {strides = array<i32>} : memref<1x1x1xf32, #tpu.memory_space<vmem>>, vector<1x1x1xf32>,
      %cst_24 = arith.constant 0.000000e+00 : f32
      %53 = vector.broadcast %cst_24 : f32 to vector<1x1x1xf32>
      %c0_25 = arith.constant 0 : index
      %c0_26 = arith.constant 0 : index
      %c0_27 = arith.constant 0 : index
      %54 = vector.load %arg6[%c0_25, %c0_26, %c0_27] : memref<1x1x1xf32, #tpu.memory_space<vmem>>, vector<1x1x1xf32>
      tpu.vector_store %arg6[%c0_25, %c0_26, %c0_27], %53 {strides = array<i32>} : memref<1x1x1xf32, #tpu.memory_space<vmem>>, vector<1x1x1xf32>,
    } else {
    }
    %c0_i32_8 = arith.constant 0 : i32
    %33 = arith.cmpi eq, %arg2, %c0_i32_8 : i32
    %34 = arith.extui %33 : i1 to i32
    %c0_i32_9 = arith.constant 0 : i32
    %35 = arith.cmpi ne, %34, %c0_i32_9 : i32
    scf.if %35 {
      %c0_20 = arith.constant 0 : index
      %c0_21 = arith.constant 0 : index
      %51 = vector.load %arg7[%c0_20, %c0_21] : memref<16x1xf32, #tpu.memory_space<vmem>>, vector<16x1xf32>
      tpu.vector_store %arg7[%c0_20, %c0_21], %25 {strides = array<i32>} : memref<16x1xf32, #tpu.memory_space<vmem>>, vector<16x1xf32>,
    } else {
    }
    %c0_i32_10 = arith.constant 0 : i32
    %36 = arith.cmpi sgt, %arg2, %c0_i32_10 : i32
    %37 = arith.extui %36 : i1 to i32
    %c0_i32_11 = arith.constant 0 : i32
    %38 = arith.cmpi ne, %37, %c0_i32_11 : i32
    scf.if %38 {
      %c0_20 = arith.constant 0 : index
      %c0_21 = arith.constant 0 : index
      %51 = vector.load %arg7[%c0_20, %c0_21] : memref<16x1xf32, #tpu.memory_space<vmem>>, vector<16x1xf32>
      %52 = arith.minimumf %51, %25 : vector<16x1xf32>
      %c0_22 = arith.constant 0 : index
      %c0_23 = arith.constant 0 : index
      %53 = vector.load %arg7[%c0_22, %c0_23] : memref<16x1xf32, #tpu.memory_space<vmem>>, vector<16x1xf32>
      tpu.vector_store %arg7[%c0_22, %c0_23], %52 {strides = array<i32>} : memref<16x1xf32, #tpu.memory_space<vmem>>, vector<16x1xf32>,
    } else {
    }
    %c0_i32_12 = arith.constant 0 : i32
    %39 = arith.cmpi eq, %arg1, %c0_i32_12 : i32
    %40 = arith.extui %39 : i1 to i32
    %c0_i32_13 = arith.constant 0 : i32
    %41 = arith.cmpi ne, %40, %c0_i32_13 : i32
    scf.if %41 {
      %51 = arith.index_cast %arg2 : i32 to index
      %c0_20 = arith.constant 0 : index
      %52 = vector.load %arg8[%51, %c0_20] : memref<1x16xf32, #tpu.memory_space<vmem>>, vector<1x16xf32>
      tpu.vector_store %arg8[%51, %c0_20], %27 {strides = array<i32>} : memref<1x16xf32, #tpu.memory_space<vmem>>, vector<1x16xf32>,
    } else {
    }
    %c0_i32_14 = arith.constant 0 : i32
    %42 = arith.cmpi sgt, %arg1, %c0_i32_14 : i32
    %43 = arith.extui %42 : i1 to i32
    %c0_i32_15 = arith.constant 0 : i32
    %44 = arith.cmpi ne, %43, %c0_i32_15 : i32
    scf.if %44 {
      %51 = arith.index_cast %arg2 : i32 to index
      %c0_20 = arith.constant 0 : index
      %52 = vector.load %arg8[%51, %c0_20] : memref<1x16xf32, #tpu.memory_space<vmem>>, vector<1x16xf32>
      %53 = arith.minimumf %52, %27 : vector<1x16xf32>
      %54 = arith.index_cast %arg2 : i32 to index
      %c0_21 = arith.constant 0 : index
      %55 = vector.load %arg8[%54, %c0_21] : memref<1x16xf32, #tpu.memory_space<vmem>>, vector<1x16xf32>
      tpu.vector_store %arg8[%54, %c0_21], %53 {strides = array<i32>} : memref<1x16xf32, #tpu.memory_space<vmem>>, vector<1x16xf32>,
    } else {
    }
    %c0_i32_16 = arith.constant 0 : i32
    %45 = arith.cmpi eq, %arg2, %c0_i32_16 : i32
    %46 = arith.extui %45 : i1 to i32
    %c0_i32_17 = arith.constant 0 : i32
    %47 = arith.cmpi ne, %46, %c0_i32_17 : i32
    scf.if %47 {
      %c0_20 = arith.constant 0 : index
      %c0_21 = arith.constant 0 : index
      %c0_22 = arith.constant 0 : index
      %51 = vector.load %arg5[%c0_20, %c0_21, %c0_22] : memref<1x1x1xf32, #tpu.memory_space<vmem>>, vector<1x1x1xf32>
      %c0_23 = arith.constant 0 : index
      %c0_24 = arith.constant 0 : index
      %52 = vector.load %arg7[%c0_23, %c0_24] : memref<16x1xf32, #tpu.memory_space<vmem>>, vector<16x1xf32>
      %53 = vector.shape_cast %52 : vector<16x1xf32> to vector<1x16x1xf32>
      %cst_25 = arith.constant dense<0.000000e+00> : vector<1xf32>
      %54 = vector.multi_reduction <add>, %53, %cst_25 [1, 2] : vector<1x16x1xf32> to vector<1xf32>
      %55 = vector.shape_cast %54 : vector<1xf32> to vector<1x1x1xf32>
      %56 = vector.extract %55[0, 0, 0] : f32 from vector<1x1x1xf32>
      %57 = vector.broadcast %56 : f32 to vector<1x1x1xf32>
      %58 = arith.addf %51, %57 : vector<1x1x1xf32>
      %c0_26 = arith.constant 0 : index
      %c0_27 = arith.constant 0 : index
      %c0_28 = arith.constant 0 : index
      %59 = vector.load %arg5[%c0_26, %c0_27, %c0_28] : memref<1x1x1xf32, #tpu.memory_space<vmem>>, vector<1x1x1xf32>
      tpu.vector_store %arg5[%c0_26, %c0_27, %c0_28], %58 {strides = array<i32>} : memref<1x1x1xf32, #tpu.memory_space<vmem>>, vector<1x1x1xf32>,
    } else {
    }
    %c0_i32_18 = arith.constant 0 : i32
    %48 = arith.cmpi eq, %arg1, %c0_i32_18 : i32
    %49 = arith.extui %48 : i1 to i32
    %c0_i32_19 = arith.constant 0 : i32
    %50 = arith.cmpi ne, %49, %c0_i32_19 : i32
    scf.if %50 {
      %c0_20 = arith.constant 0 : index
      %c0_21 = arith.constant 0 : index
      %c0_22 = arith.constant 0 : index
      %51 = vector.load %arg6[%c0_20, %c0_21, %c0_22] : memref<1x1x1xf32, #tpu.memory_space<vmem>>, vector<1x1x1xf32>
      %52 = arith.index_cast %arg2 : i32 to index
      %c0_23 = arith.constant 0 : index
      %53 = vector.load %arg8[%52, %c0_23] : memref<1x16xf32, #tpu.memory_space<vmem>>, vector<1x16xf32>
      %54 = vector.shape_cast %53 : vector<1x16xf32> to vector<1x1x16xf32>
      %cst_24 = arith.constant dense<0.000000e+00> : vector<1xf32>
      %55 = vector.multi_reduction <add>, %54, %cst_24 [1, 2] : vector<1x1x16xf32> to vector<1xf32>
      %56 = vector.shape_cast %55 : vector<1xf32> to vector<1x1x1xf32>
      %57 = vector.extract %56[0, 0, 0] : f32 from vector<1x1x1xf32>
      %58 = vector.broadcast %57 : f32 to vector<1x1x1xf32>
      %59 = arith.addf %51, %58 : vector<1x1x1xf32>
      %c0_25 = arith.constant 0 : index
      %c0_26 = arith.constant 0 : index
      %c0_27 = arith.constant 0 : index
      %60 = vector.load %arg6[%c0_25, %c0_26, %c0_27] : memref<1x1x1xf32, #tpu.memory_space<vmem>>, vector<1x1x1xf32>
      tpu.vector_store %arg6[%c0_25, %c0_26, %c0_27], %59 {strides = array<i32>} : memref<1x1x1xf32, #tpu.memory_space<vmem>>, vector<1x1x1xf32>,
    } else {
    }
    return
  }
  func.func @transform_0(%arg0: i32, %arg1: i32, %arg2: i32) -> (i32, i32, i32) {
    %c0_i32 = arith.constant 0 : i32
    %c0_i32_0 = arith.constant 0 : i32
    return %arg0, %c0_i32, %arg2 : i32, i32, i32
  }
  func.func @transform_1(%arg0: i32, %arg1: i32, %arg2: i32) -> (i32, i32, i32) {
    %c0_i32 = arith.constant 0 : i32
    %c0_i32_0 = arith.constant 0 : i32
    return %arg0, %arg1, %c0_i32 : i32, i32, i32
  }
  func.func @transform_2(%arg0: i32, %arg1: i32, %arg2: i32) -> (i32, i32, i32) {
    %c0_i32 = arith.constant 0 : i32
    %c0_i32_0 = arith.constant 0 : i32
    %c0_i32_1 = arith.constant 0 : i32
    return %arg0, %c0_i32, %c0_i32_0 : i32, i32, i32
  }
  func.func @transform_3(%arg0: i32, %arg1: i32, %arg2: i32) -> (i32, i32, i32) {
    %c0_i32 = arith.constant 0 : i32
    %c0_i32_0 = arith.constant 0 : i32
    %c0_i32_1 = arith.constant 0 : i32
    return %arg0, %c0_i32, %c0_i32_0 : i32, i32, i32
  }
}

</mosaic_0001>

<bundles_post_ra>
// kernel: tpu_custom_call.1
= control target key start
LH: loop header
LB: loop body
LE: loop exit
PB: predicated region body
PF: predicated region fallthrough
CT: control target
= control target key end

     0   :  { %s597_s12 = smov 0   ;;  %s599_s13 = smov 0   ;;  %s646_s0 = inlined_call_operand.vmem [shape: f32[2,3,16], index: 0, kind: input, shape index: {}]   ;;  %s647_s1 = inlined_call_operand.vmem [shape: f32[2,16,3], index: 1, kind: input, shape index: {}]   ;;  %s648_s2 = inlined_call_operand.vmem [shape: f32[2,1,1], index: 2, kind: output, shape index: {0}]   ;;  %s649_s3 = inlined_call_operand.vmem [shape: f32[2,1,1], index: 3, kind: output, shape index: {1}]  }
   0x1   :  { %s601_s14 = smov 0  }
   0x2 LB: > { %s33_s15 = sadd.s32 1, %s567_s13  ;;  %p506_p0 = scmp.ge.s32.totalorder %s571_s14, 1  ;;  %s571_s14 = sphi %s601_s14, %s14_s14   ;;  %s567_s13 = sphi %s599_s13, %s651_s13   ;;  %s563_s12 = sphi %s597_s12, %s650_s12  }
   0x3   : > { %p35_p1 = scmp.ge.s32.totalorder %s33_s15, 2  ;;  %p180_p2 = scmp.lt.s32.totalorder %s571_s14, 3 }
   0x5   : > { %s653_s15 = smov (%p35_p1, %s33_s15), 0  ;;  %p181_p3 = pnand %p506_p0, %p180_p2 }
   0x6   : > { %p216_p4 = scmp.lt.s32.totalorder (!%p181_p3), %s563_s12, 1  ;;  %v573_v0 = vmov (!%p181_p3), 1   ;;  %v574_v1 = vmov (!%p181_p3), 0   ;;  %v575_v4 = vmov (!%p181_p3), 2   ;;  %v252_v5 = vlaneseq (!%p181_p3) }
   0x7   : > { %184 = sbr.rel (%p181_p3) target bundleno = 524 (0x20c), region = 28  ;;  %546 = vset.pattern.permute.xlu1 (!%p181_p3), %v573_v0  ;;  %545 = vset.pattern.permute.xlu0 (!%p181_p3), %v574_v1  ;;  %vm296_vm0 = vcmask (!%p181_p3), 130048   ;;  %vm340_vm1 = vcmask (!%p181_p3), 122880   ;;  %vm322_vm2 = vcmask (!%p181_p3), 7168   ;;  %vm316_vm3 = vcmask (!%p181_p3), 0  }
   0x8   : > { %v253_v6 = vshrl.u32 (!%p181_p3), %v252_v5, 7  ;;  %v576_v54 = vmov (!%p181_p3), 0.0  }
   0xa   : > { %v270_v7 = vsub.s32 (!%p181_p3), 1, %v253_v6  ;;  %v254_v8 = vsub.s32 (!%p181_p3), 0, %v253_v6  ;;  %v288_v14 = vsub.s32 (!%p181_p3), 2, %v253_v6 }
   0xe   : > { %s655_s12 = smov (!%p216_p4, %s563_s12), 1 }
   0xf   : > { %s512_s16 = sshll.u32 %s655_s12, 4  ;;  %s507_s20 = sshll.u32 %s655_s12, 2 }
  0x10   : > { %s231_s19 = scalar_lea.vmem %s647_s1, %s512_s16  ;;  %s222_s23 = scalar_lea.vmem %s646_s0, %s507_s20 }
  0x11   : > { %v240_v2 = vld [vmem:[%s231_s19] sm:$0xff]  ;;  %v241_v3 = vld [vmem:[%s231_s19 + $0x8] sm:$0xff]  ;;  %s235_s26 = scalar_lea.vmem %s648_s2, %s655_s12  ;;  %s238_s29 = scalar_lea.vmem %s649_s3, %s655_s12 }
  0x12   : > { %261 = vperm.xlu1 %546, %v240_v2   ;;  %244 = vperm.xlu0 %545, %v240_v2   ;;  %v239_v9 = vld [vmem:[%s222_s23] sm:$0x7]  ;;  %317 = vst.msk [vmem:[%s235_s26] sm:$0x1] %vm316_vm3, %v576_v54  ;;  %318 = vst.msk [vmem:[%s238_s29] sm:$0x1] %vm316_vm3, %v576_v54 }
  0x13   : > { %v271_v11 = vrot.slane %v239_v9, %v270_v7  ;;  %v255_v13 = vrot.slane %v239_v9, %v254_v8  ;;  %v289_v21 = vrot.slane %v239_v9, %v288_v14 }
  0x16   : > { %265 = vperm.xlu1 %546, %v241_v3   ;;  %249 = vperm.xlu0 %545, %v241_v3  }
  0x19   : > { %v354_v5 = vld [vmem:[%s235_s26] sm:$0x1] }
  0x1a   : > { %548 = vset.pattern.permute.xlu1 %v575_v4  ;;  %547 = vset.pattern.permute.xlu0 %v575_v4  ;;  %v377_v6 = vld [vmem:[%s238_s29] sm:$0x1] }
  0x1b   : > { %283 = vperm.xlu1 %548, %v241_v3   ;;  %279 = vperm.xlu0 %547, %v240_v2  }
  0x91   : > { %v262_v10 = vpop.permute.xlu1 %261  ;;  %v245_v12 = vpop.permute.xlu0 %244 }
  0x92   : > { %v272_v15 = vsub.f32 %v262_v10, %v271_v11  ;;  %v256_v16 = vsub.f32 %v245_v12, %v255_v13 }
  0x94   : > { %v274_v22 = vmul.f32 %v272_v15, %v272_v15  ;;  %v258_v23 = vmul.f32 %v256_v16, %v256_v16 }
  0x95   : > { %v266_v17 = vpop.permute.xlu1 %265  ;;  %v250_v18 = vpop.permute.xlu0 %249 }
  0x96   : > { %v273_v19 = vsub.f32 %v266_v17, %v271_v11  ;;  %v257_v20 = vsub.f32 %v250_v18, %v255_v13  ;;  %v276_v30 = vadd.f32 %v274_v22, %v258_v23 }
  0x98   : > { %v275_v24 = vmul.f32 %v273_v19, %v273_v19  ;;  %v259_v25 = vmul.f32 %v257_v20, %v257_v20 }
  0x9a   : > { %v284_v26 = vpop.permute.xlu1 %283  ;;  %v280_v27 = vpop.permute.xlu0 %279  ;;  %v277_v31 = vadd.f32 %v275_v24, %v259_v25 }
  0x9b   : > { %v291_v28 = vsub.f32 %v284_v26, %v289_v21  ;;  %v290_v29 = vsub.f32 %v280_v27, %v289_v21 }
  0x9d   : > { %v293_v32 = vmul.f32 %v291_v28, %v291_v28  ;;  %v292_v33 = vmul.f32 %v290_v29, %v290_v29 }
  0x9f   : > { %v295_v34 = vadd.f32 %v293_v32, %v277_v31  ;;  %v294_v35 = vadd.f32 %v292_v33, %v276_v30 }
  0xa1   : > { %v300_v36 = vsel %vm296_vm0, %v295_v34, inf  ;;  %v297_v37 = vsel %vm296_vm0, %v294_v35, inf }
  0xa2   : > { %301 = vmin.xlane.f32.xlu0 %v300_v36  ;;  %298 = vmin.xlane.f32.xlu1 %v297_v37  ;;  %v303_v38 = vmin.f32 %v297_v37, %v300_v36 }
  0xa4   : > { %v304_v39 = vrot.slane %v303_v38, 4 }
  0xa6   : > { %v305_v40 = vmin.f32 %v303_v38, %v304_v39 }
  0xa8   : > { %v306_v41 = vrot.slane %v305_v40, 2 }
  0xaa   : > { %v307_v42 = vmin.f32 %v305_v40, %v306_v41 }
  0xac   : > { %v308_v43 = vrot.slane %v307_v42, 1 }
  0xae   : > { %v309_v44 = vmin.f32 %v307_v42, %v308_v43 }
  0xb0   : > { %341 = vst.msk [vmem:[#allocation3] sm:$0x1] %vm340_vm1, %v309_v44 }
  0xb7   : > { %v379_v45 = vld [vmem:[#allocation3] sm:$0x1] }
  0xb8   : > { %v381_v46 = vsel %vm340_vm1, %v379_v45, 0.0 }
  0xb9   : > { %382 = vadd.xlane.f32.xlu1 %v381_v46 }
 0x12f   : > { %v302_v47 = vpop.xlane.xlu0 %301  ;;  %v299_v48 = vpop.xlane.xlu1 %298 }
 0x130   : > { %324 = vst.msk [vmem:[#allocation2 + $0x8] sm:$0xff] %vm322_vm2, %v302_v47  ;;  %323 = vst.msk [vmem:[#allocation2] sm:$0xff] %vm322_vm2, %v299_v48 }
 0x137   : > { %v355_v49 = vld [vmem:[#allocation2] sm:$0xff]  ;;  %v356_v50 = vld [vmem:[#allocation2 + $0x8] sm:$0xff] }
 0x138   : > { %v358_v51 = vsel %vm322_vm2, %v355_v49, 0.0  ;;  %v359_v52 = vsel %vm322_vm2, %v356_v50, 0.0 }
 0x139   : > { %v360_v53 = vadd.f32 %v359_v52, %v358_v51 }
 0x13b   : > { %361 = vadd.xlane.f32.xlu0 %v360_v53 }
 0x146   : > { %v383_v55 = vpop.xlane.xlu1 %382 }
 0x147   : > { %v384_v56 = vrot.slane %v383_v55, 4 }
 0x149   : > { %v385_v57 = vadd.f32 %v384_v56, %v383_v55 }
 0x14b   : > { %v386_v58 = vrot.slane %v385_v57, 2 }
 0x14d   : > { %v387_v62 = vadd.f32 %v386_v58, %v385_v57 }
 0x14f   : > { %v388_v1 = vrot.slane %v387_v62, 1 }
 0x151   : > { %v389_v4 = vadd.f32 %v388_v1, %v387_v62 }
 0x1c8   : > { %v362_v59 = vpop.xlane.xlu0 %361 }
 0x1c9   : > { %v363_v60 = vrot.slane %v362_v59, 4 }
 0x1cb   : > { %v364_v61 = vadd.f32 %v363_v60, %v362_v59 }
 0x1cd   : > { %v365_v63 = vrot.slane %v364_v61, 2 }
 0x1cf   : > { %v366_v0 = vadd.f32 %v365_v63, %v364_v61 }
 0x1d1   : > { %v367_v2 = vrot.slane %v366_v0, 1 }
 0x1d3   : > { %v368_v3 = vadd.f32 %v367_v2, %v366_v0 }
 0x1d5   : > { %513 = vpush %v368_v3 }
 0x1d6   : > { %515 = vpush %v389_v4 }
 0x206   : > { %s514_s30 = spop %513 }
 0x207   : > { %v370_v7 = vstv %s514_s30  ;;  %s516_s4 = spop %515 }
 0x208   : > { %v371_v8 = vadd.f32 %v370_v7, %v354_v5  ;;  %v391_v9 = vstv %s516_s4 }
 0x209   : > { %v392_v10 = vadd.f32 %v391_v9, %v377_v6 }
 0x20a   : > { %373 = vst.msk [vmem:[%s235_s26] sm:$0x1] %vm316_vm3, %v371_v8 }
 0x20b   : > { %394 = vst.msk [vmem:[%s238_s29] sm:$0x1] %vm316_vm3, %v392_v10 }
 0x20c PF: > { %s14_s14 = sadd.s32 1, %s571_s14   ;;  %s650_s12 = smov %s567_s13 }
 0x20d   : > { %p11_p5 = scmp.ge.s32.totalorder %s14_s14, 4   ;;  %s651_s13 = smov %s653_s15 }
 0x20f   :  { %13 = sbr.rel (!%p11_p5) target bundleno = 2 (0x2), region = 104 }

</bundles_post_ra>
